<compile_context>
chip_gen: v7x
topology: tpu7x:2x2x1
jax: 0.10.0
libtpu: 0.0.40
codegen_flags: <defaults>
</compile_context>

<pallas_src>
import functools

import jax
import jax.numpy as jnp
from jax.experimental import pallas as pl
from jax.experimental.pallas import tpu as pltpu


def _round_up(x, m):
    return ((x + m - 1) // m) * m


def _fflstm_classifier_kernel(x_ref, w_ref, b_ref, o_ref, *, compute_dtype):
    """o = relu(x) @ W + b for one batch tile.

    x_ref : (TB, K)  feat tile (input dtype, e.g. f32)
    w_ref : (K, N)   fc weight, pre-transposed to K-major (compute dtype)
    b_ref : (1, N)   fc bias (f32)
    o_ref : (TB, N)  output logits tile (f32)
    """
    # ReLU in the input dtype (f32) — native VALU path on v5e — then cast to
    # the compute dtype only for the MXU feed.
    x = jnp.maximum(x_ref[...], 0.0).astype(compute_dtype)           # VPU
    acc = jnp.dot(x, w_ref[...], preferred_element_type=jnp.float32)  # MXU, f32 acc
    o_ref[...] = (acc + b_ref[...]).astype(o_ref.dtype)


@functools.partial(jax.jit, static_argnames=("tile_b", "compute_dtype"))
def fflstm_classifier_forward(feat, weight, bias, *, tile_b=4096,
                              compute_dtype=jnp.bfloat16):
    """Pallas implementation of FFLSTMClassifier.forward (eval mode).

    feat:   (B, fc2_size) float32
    weight: (num_classes, fc2_size) float32   (PyTorch nn.Linear layout)
    bias:   (num_classes,) float32
    returns (B, num_classes) float32 logits
    """
    B, K = feat.shape
    N, K2 = weight.shape
    assert K == K2, "feat feature dim must match fc2_size"

    # One-time, grid-resident parameter prep (tiny; fused by XLA):
    #   (N, K) -> (K, N) transpose + cast so the MXU gets a K-major RHS.
    w_t = weight.T.astype(compute_dtype)
    b2 = bias.astype(jnp.float32).reshape(1, N)

    # Tile sizing:
    #  * big tiles amortize the ~0.35 us/step pipeline overhead,
    #  * but keep >= 2 grid steps when B allows so v7x's two TCs both get work,
    #  * round to a multiple of 16 (bf16 packs 2 rows/sublane).
    half_b = _round_up(pl.cdiv(B, 2), 16)
    tile_b_eff = max(16, min(tile_b, half_b))
    tile_b_eff = min(tile_b_eff, _round_up(B, 16))
    grid = (pl.cdiv(B, tile_b_eff),)

    itemsize_in = jnp.dtype(feat.dtype).itemsize
    itemsize_w = jnp.dtype(compute_dtype).itemsize
    cost = pl.CostEstimate(
        flops=2 * B * N * K,
        transcendentals=0,
        bytes_accessed=B * K * itemsize_in + K * N * itemsize_w + B * N * 4,
    )

    kernel = functools.partial(_fflstm_classifier_kernel,
                               compute_dtype=compute_dtype)

    return pl.pallas_call(
        kernel,
        out_shape=jax.ShapeDtypeStruct((B, N), jnp.float32),
        grid_spec=pl.GridSpec(
            grid=grid,
            in_specs=[
                # feat: tile over batch only; ragged B handled by partial blocks.
                pl.BlockSpec((tile_b_eff, K), lambda i: (i, 0)),
                # weight: whole (K, N) block, constant across grid (no re-DMA).
                pl.BlockSpec((K, N), lambda i: (0, 0)),
                # bias: whole (1, N) block.
                pl.BlockSpec((1, N), lambda i: (0, 0)),
            ],
            out_specs=pl.BlockSpec((tile_b_eff, N), lambda i: (i, 0)),
        ),
        compiler_params=pltpu.CompilerParams(
            dimension_semantics=("parallel",),
        ),
        cost_estimate=cost,
    )(feat, w_t, b2)


def _reference(feat, weight, bias):
    """Pure-JAX f32 reference of the PyTorch forward (eval mode)."""
    return jnp.maximum(feat, 0.0) @ weight.T + bias


if __name__ == "__main__":
    # Small shapes consistent with the module: fc2_size=128, num_classes=16.
    # Ragged batch (20, not a multiple of 16) to exercise the partial-block path
    # and the >=2-grid-step tiling (tile_b_eff = 16 -> grid of 2).
    B, FC2, NUM_CLASSES = 20, 128, 16

    key = jax.random.PRNGKey(0)
    k_feat, k_w, k_b = jax.random.split(key, 3)

    feat = jax.random.normal(k_feat, (B, FC2), dtype=jnp.float32)

    # Deterministic parameter init mirroring nn.Linear's default
    # uniform(-1/sqrt(in_features), 1/sqrt(in_features)).
    bound = 1.0 / jnp.sqrt(jnp.float32(FC2))
    weight = jax.random.uniform(
        k_w, (NUM_CLASSES, FC2), dtype=jnp.float32, minval=-bound, maxval=bound
    )
    bias = jax.random.uniform(
        k_b, (NUM_CLASSES,), dtype=jnp.float32, minval=-bound, maxval=bound
    )

    ref = _reference(feat, weight, bias)

    # Default fast path: f32 feat read, in-kernel bf16 cast, f32 accumulation.
    # Numerical contract: bf16 MXU inputs -> validated to ~3e-2 vs f32 torch.
    out_bf16 = jax.block_until_ready(fflstm_classifier_forward(feat, weight, bias))
    assert out_bf16.shape == (B, NUM_CLASSES)
    assert out_bf16.dtype == jnp.float32
    assert jnp.allclose(out_bf16, ref, atol=3e-2, rtol=3e-2), \
        "bf16 kernel mismatch vs reference"

    # Exact f32 path kept for parity testing of the kernel structure.
    out_f32 = jax.block_until_ready(
        fflstm_classifier_forward(feat, weight, bias, compute_dtype=jnp.float32)
    )
    assert jnp.allclose(out_f32, ref, atol=1e-5, rtol=1e-5), \
        "f32 kernel mismatch vs reference"

    print("KERNEL_OK")
</pallas_src>

<mosaic_0001>
module attributes {stable_mosaic.version = 11 : i64} {
  func.func @_fflstm_classifier_kernel(%arg0: i32, %arg1: memref<16x128xf32, #tpu.memory_space<vmem>>, %arg2: memref<128x16xbf16, #tpu.memory_space<vmem>>, %arg3: memref<1x16xf32, #tpu.memory_space<vmem>>, %arg4: memref<16x16xf32, #tpu.memory_space<vmem>>) attributes {dimension_semantics = [#tpu.dimension_semantics<parallel>], iteration_bounds = array<i64: 2>, scalar_prefetch = 0 : i64, scratch_operands = 0 : i64, tpu.core_type = #tpu.core_type<tc>, window_params = [{transform_indices = @transform_0, window_bounds = array<i64: 16, 128>}, {pipeline_mode = #tpu.pipeline_mode<synchronous>, transform_indices = @transform_1, window_bounds = array<i64: 128, 16>}, {pipeline_mode = #tpu.pipeline_mode<synchronous>, transform_indices = @transform_2, window_bounds = array<i64: 1, 16>}, {transform_indices = @transform_3, window_bounds = array<i64: 16, 16>}]} {
    %c0 = arith.constant 0 : index
    %c0_0 = arith.constant 0 : index
    %0 = vector.load %arg1[%c0, %c0_0] : memref<16x128xf32, #tpu.memory_space<vmem>>, vector<16x128xf32>
    %cst = arith.constant 0.000000e+00 : f32
    %1 = vector.broadcast %cst : f32 to vector<16x128xf32>
    %2 = arith.maximumf %0, %1 : vector<16x128xf32>
    %3 = arith.truncf %2 : vector<16x128xf32> to vector<16x128xbf16>
    %c0_1 = arith.constant 0 : index
    %c0_2 = arith.constant 0 : index
    %4 = vector.load %arg2[%c0_1, %c0_2] : memref<128x16xbf16, #tpu.memory_space<vmem>>, vector<128x16xbf16>
    %cst_3 = arith.constant dense<0.000000e+00> : vector<16x16xf32>
    %5 = tpu.matmul %3, %4, %cst_3 {dimension_numbers = #tpu.dot_dimension_numbers<[1], [0], [0], [1], [0, 0, 1, 1], [], []>} : vector<16x128xbf16>, vector<128x16xbf16>, vector<16x16xf32> -> vector<16x16xf32>
    %c0_4 = arith.constant 0 : index
    %c0_5 = arith.constant 0 : index
    %6 = vector.load %arg3[%c0_4, %c0_5] : memref<1x16xf32, #tpu.memory_space<vmem>>, vector<1x16xf32>
    %7 = vector.broadcast %6 : vector<1x16xf32> to vector<16x16xf32>
    %8 = arith.addf %5, %7 : vector<16x16xf32>
    %c0_6 = arith.constant 0 : index
    %c0_7 = arith.constant 0 : index
    %9 = vector.load %arg4[%c0_6, %c0_7] : memref<16x16xf32, #tpu.memory_space<vmem>>, vector<16x16xf32>
    tpu.vector_store %arg4[%c0_6, %c0_7], %8 {strides = array<i32>} : memref<16x16xf32, #tpu.memory_space<vmem>>, vector<16x16xf32>,
    return
  }
  func.func @transform_0(%arg0: i32) -> (i32, i32) {
    %c0_i32 = arith.constant 0 : i32
    %c0_i32_0 = arith.constant 0 : i32
    return %arg0, %c0_i32 : i32, i32
  }
  func.func @transform_1(%arg0: i32) -> (i32, i32) {
    %c0_i32 = arith.constant 0 : i32
    %c0_i32_0 = arith.constant 0 : i32
    %c0_i32_1 = arith.constant 0 : i32
    return %c0_i32, %c0_i32_0 : i32, i32
  }
  func.func @transform_2(%arg0: i32) -> (i32, i32) {
    %c0_i32 = arith.constant 0 : i32
    %c0_i32_0 = arith.constant 0 : i32
    %c0_i32_1 = arith.constant 0 : i32
    return %c0_i32, %c0_i32_0 : i32, i32
  }
  func.func @transform_3(%arg0: i32) -> (i32, i32) {
    %c0_i32 = arith.constant 0 : i32
    %c0_i32_0 = arith.constant 0 : i32
    return %arg0, %c0_i32 : i32, i32
  }
}

</mosaic_0001>

<bundles_post_ra>
// kernel: fflstm_classifier_forward.1
= control target key start
LH: loop header
LB: loop body
LE: loop exit
PB: predicated region body
PF: predicated region fallthrough
CT: control target
= control target key end

     0   :  { %s805_s12 = smov 0   ;;  %s807_s13 = smov 0   ;;  %s915_s0 = inlined_call_operand.vmem [shape: f32[20,128], index: 0, kind: input, shape index: {}]   ;;  %s916_s1 = inlined_call_operand.vmem [shape: bf16[128,16], index: 1, kind: input, shape index: {}]   ;;  %s917_s2 = inlined_call_operand.vmem [shape: f32[1,16], index: 2, kind: input, shape index: {}]   ;;  %s918_s3 = inlined_call_operand.vmem [shape: f32[20,16], index: 3, kind: output, shape index: {}]  }
   0x1   :  { %s809_s14 = smov 0  }
   0x2 LB: > { %s818_s15 = sadd.s32 4294967295, %s749_s14   ;;  %s820_s16 = sadd.s32 1, %s749_s14   ;;  %s749_s14 = sphi %s809_s14, %s922_s14   ;;  %s745_s13 = sphi %s807_s13, %s921_s13   ;;  %s741_s12 = sphi %s805_s12, %s920_s12  }
   0x3   : > { %s85_s17 = ssub.s32 %s749_s14, %s820_s16  ;;  %s88_s18 = sadd.s32 1, %s745_s13 }
   0x4   : > { %p86_p0 = scmp.eq.s32.totalorder %s85_s17, 0  ;;  %p98_p1 = scmp.ne.s32.totalorder %s745_s13, %s741_s12 }
   0x5   : > { %p99_p2 = scmp.eq.s32.totalorder %s818_s15, 1  ;;  %p535_p3 = scmp.ge.s32.totalorder %s749_s14, 1 }
   0x6   : > { %s828_s19 = scalar_select %p86_p0, %s745_s13, %s88_s18  }
   0x7   : > { %p830_p4 = por %p99_p2, %p98_p1  ;;  %p146_p5 = scmp.lt.s32.totalorder %s749_s14, 3 }
   0x9   : > { %p147_p6 = pnand %p535_p3, %p146_p5 }
   0xa   : > { %v687_v0 = vld [vmem:[%s916_s1] sm:$0xff] (!%p147_p6)   ;;  %v783_v1 = vmov (!%p147_p6), 0.0   ;;  %v688_v2 = vld [vmem:[%s916_s1 + $0x8] sm:$0xff] (!%p147_p6)   ;;  %vm784_vm0 = vmmov (!%p147_p6), 0   ;;  %s841_s25 = sshll.u32 (!%p147_p6), %s818_s15, 1  ;;  %v689_v3 = vld [vmem:[%s916_s1 + $0x10] sm:$0xff] (!%p147_p6)  }
   0xb   : > { %150 = sbr.rel (%p147_p6) target bundleno = 309 (0x135), region = 32  ;;  %577 = vmatprep.subr.bf16.mxu0 (!%p147_p6), %v783_v1  ;;  %593 = vmatprep.mubr.msk.bf16.mxu0 (!%p147_p6), %vm784_vm0, %v783_v1  ;;  %p178_p7 = scmp.lt.s32.totalorder (!%p147_p6), %s841_s25, 2  ;;  %v690_v4 = vld [vmem:[%s916_s1 + $0x18] sm:$0xff] (!%p147_p6)   ;;  %v691_v5 = vld [vmem:[%s916_s1 + $0x20] sm:$0xff] (!%p147_p6)   ;;  %v692_v6 = vld [vmem:[%s916_s1 + $0x28] sm:$0xff] (!%p147_p6)   ;;  %vm310_vm1 = vcmask (!%p147_p6), 130048  }
   0xc   : > { %578 = vmatpush3.bf16.msra.mxu0 (!%p147_p6), %v687_v0  ;;  %v693_v7 = vld [vmem:[%s916_s1 + $0x30] sm:$0xff] (!%p147_p6)   ;;  %v694_v12 = vld [vmem:[%s916_s1 + $0x38] sm:$0xff] (!%p147_p6)   ;;  %s170_s22 = sand.u32 (!%p147_p6), 1, %s741_s12   ;;  %v539_v14 = vld [vmem:[%s917_s2] ss:$0 sm:$0xff] (!%p147_p6) }
   0xd   : > { %579 = vmatprep.subr.bf16.mxu0 (!%p147_p6), %v783_v1  ;;  %s536_s23 = sshll.u32 (!%p147_p6), %s170_s22, 4 }
   0xe   : > { %s870_s27 = scalar_lea.vmem (!%p147_p6), [#allocation2], %s536_s23  }
  0x10   : > { %580 = vmatpush3.bf16.msra.mxu0 (!%p147_p6), %v688_v2 }
  0x11   : > { %581 = vmatprep.subr.bf16.mxu0 (!%p147_p6), %v783_v1 }
  0x12   : > { %s179_s30 = scalar_select %p178_p7, %s841_s25, 2 }
  0x13   : > { %s321_s12 = ssub.s32 (%p830_p4), 3, %s841_s25  ;;  %s565_s28 = sshll.u32 (%p830_p4), %s818_s15, 4 }
  0x14   : > { %582 = vmatpush3.bf16.msra.mxu0 %v689_v3  ;;  %s538_s6 = sshll.u32 %s179_s30, 3  ;;  %p322_p8 = scmp.lt.s32.totalorder (%p830_p4), %s321_s12, 2 }
  0x15   : > { %583 = vmatprep.subr.bf16.mxu0 %v783_v1  ;;  %s181_s11 = scalar_lea.vmem %s915_s0, %s538_s6  ;;  %s881_s4 = scalar_lea.vmem (%p830_p4), %s918_s3, %s565_s28  }
  0x16   : > { %v193_v8 = vld [vmem:[%s181_s11] sm:$0xff]  ;;  %v194_v9 = vld [vmem:[%s181_s11 + $0x8] sm:$0xff] }
  0x17   : > { %v195_v10 = vmax.f32 %v193_v8, 0.0  ;;  %v196_v11 = vmax.f32 %v194_v9, 0.0 }
  0x18   : > { %584 = vmatpush3.bf16.msra.mxu0 %v690_v4 }
  0x19   : > { %585 = vmatprep.subr.bf16.mxu0 %v783_v1  ;;  %v197_v13 = vpack.c.bf16 %v196_v11, %v195_v10 }
  0x1c   : > { %586 = vmatpush3.bf16.msra.mxu0 %v691_v5 }
  0x1d   : > { %587 = vmatprep.subr.bf16.mxu0 %v783_v1 }
  0x20   : > { %588 = vmatpush3.bf16.msra.mxu0 %v692_v6 }
  0x21   : > { %589 = vmatprep.subr.bf16.mxu0 %v783_v1 }
  0x24   : > { %590 = vmatpush3.bf16.msra.mxu0 %v693_v7 }
  0x25   : > { %591 = vmatprep.subr.bf16.mxu0 %v783_v1 }
  0x28   : > { %592 = vmatpush3.bf16.msra.mxu0 %v694_v12 }
  0x2b   : > { %594 = vmatmul.mubr.bf16.vlgmr.msra.gmra.mrb[0].mxu0 %v197_v13 }
  0xfd   : > { %319 = sbr.rel (!%p830_p4) target bundleno = 309 (0x135), region = 36 }
  0xfe   : > { %v303_v15 = vpop.f32.mrb[0].mxu0 }
  0xff   : > { %v304_v16 = vadd.f32 %v539_v14, %v303_v15  ;;  %v595_v17 = vpop.f32.mrb[1].mxu0 }
 0x100   : > { %v306_v18 = vpop.f32.mrb[2].mxu0 }
 0x101   : > { %311 = vst.msk [vmem:[%s870_s27] sm:$0xff] %vm310_vm1, %v304_v16  ;;  %v307_v19 = vadd.f32 %v539_v14, %v306_v18  ;;  %v596_v20 = vpop.f32.mrb[3].mxu0 }
 0x103   : > { %312 = vst.msk [vmem:[%s870_s27 + $0x8] sm:$0xff] %vm310_vm1, %v307_v19 }
 0x104   : > { %s924_s12 = smov (!%p322_p8, %s321_s12), 2 }
 0x105   : > { %s550_s5 = sshll.u32 %s924_s12, 7 }
 0x106   : > { %p553_p9 = scmp.eq.s32.totalorder %s550_s5, 0 }
 0x107   : > { %s887_s6 = sshrl.u32 (!%p553_p9), %s924_s12, 1 }
 0x108   : > { %330 = sbr.rel (%p553_p9) target bundleno = 309 (0x135), region = 40  ;;  %p554_p10 = scmp.le.s32.totalorder (!%p553_p9), %s887_s6, 0 }
 0x10f   : > { %488 = sbr.rel (%p554_p10) target bundleno = 288 (0x120), region = 116  ;;  %s751_s15 = smov (!%p554_p10), %s881_s4  }
 0x110   : > { %s755_s20 = smov (!%p554_p10), %s870_s27   ;;  %s759_s25 = smov (!%p554_p10), 0  }
 0x111   : > { %s763_s7 = smov (!%p554_p10), 0  }
 0x116 LB: >> { %v394_v21 = vld [vmem:[%s757_s20] sm:$0xff]  ;;  %v396_v22 = vld [vmem:[%s757_s20 + $0x8] sm:$0xff]  ;;  %s398_s8 = sadd.s32 1, %s761_s25  ;;  %s388_s7 = sadd.s32 1, %s765_s7   ;;  %s765_s7 = sphi %s763_s7, %s388_s7   ;;  %s761_s25 = sphi %s759_s25, %s760_s25   ;;  %s757_s20 = sphi %s755_s20, %s403_s20   ;;  %s753_s15 = sphi %s751_s15, %s404_s15  }
 0x117   : >> { %395 = vst [vmem:[%s753_s15] sm:$0xff] %v394_v21  ;;  %397 = vst [vmem:[%s753_s15 + $0x8] sm:$0xff] %v396_v22  ;;  %p399_p11 = scmp.ge.s32.totalorder %s398_s8, %s887_s6  ;;  %p387_p12 = scmp.ge.s32.totalorder %s388_s7, %s887_s6 }
 0x119   : >> { %s926_s8 = smov (%p399_p11, %s398_s8), 0  ;;  %390 = sbr.rel (!%p387_p12) target bundleno = 278 (0x116), region = 122 }
 0x11a   : >> { %s555_s9 = sshll.u32 %s926_s8, 4  ;;  %s760_s25 = smov %s926_s8  }
 0x11b   : >> { %s403_s20 = scalar_lea.vmem %s870_s27, %s555_s9 [#allocation2]   ;;  %s404_s15 = scalar_lea.vmem %s881_s4, %s555_s9  }
 0x120 PF: > { %s897_s10 = sand.u32 1, %s924_s12   ;;  %s566_s11 = sshll.u32 %s887_s6, 4 }
 0x121   : > { %s409_s14 = scalar_lea.vmem %s870_s27, %s566_s11 [#allocation2]   ;;  %s411_s17 = scalar_lea.vmem %s881_s4, %s566_s11  }
 0x122   : > { %p560_p13 = scmp.le.s32.totalorder %s897_s10, 0 }
 0x123   : > { %s767_s18 = smov (!%p560_p13), %s411_s17   ;;  %s771_s21 = smov (!%p560_p13), %s409_s14  }
 0x124   : > { %502 = sbr.rel (%p560_p13) target bundleno = 309 (0x135), region = 127  ;;  %s775_s22 = smov (!%p560_p13), 0  }
 0x125   : > { %s779_s23 = smov (!%p560_p13), 0  }
 0x12b LB: >> { %v421_v23 = vld [vmem:[%s773_s21] sm:$0xff]  ;;  %s423_s24 = sadd.s32 1, %s777_s22  ;;  %s415_s23 = sadd.s32 1, %s781_s23   ;;  %s781_s23 = sphi %s779_s23, %s415_s23   ;;  %s777_s22 = sphi %s775_s22, %s776_s22   ;;  %s773_s21 = sphi %s771_s21, %s428_s21   ;;  %s769_s18 = sphi %s767_s18, %s429_s18  }
 0x12c   : >> { %422 = vst [vmem:[%s769_s18] sm:$0xff] %v421_v23  ;;  %p424_p0 = scmp.ge.s32.totalorder %s423_s24, %s897_s10  ;;  %p414_p1 = scmp.ge.s32.totalorder %s415_s23, %s897_s10 }
 0x12e   : >> { %s928_s24 = smov (%p424_p0, %s423_s24), 0  ;;  %417 = sbr.rel (!%p414_p1) target bundleno = 299 (0x12b), region = 133 }
 0x12f   : >> { %s561_s26 = sshll.u32 %s928_s24, 3  ;;  %s776_s22 = smov %s928_s24  }
 0x130   : >> { %s428_s21 = scalar_lea.vmem %s409_s14, %s561_s26 [#allocation2]   ;;  %s429_s18 = scalar_lea.vmem %s411_s17, %s561_s26  }
 0x135 PF: > { %p10_p2 = scmp.ge.s32.totalorder %s820_s16, 4   ;;  %s920_s12 = smov %s745_s13 }
 0x136   : > { %s921_s13 = smov %s828_s19  ;;  %s922_s14 = smov %s820_s16 }
 0x137   :  { %12 = sbr.rel (!%p10_p2) target bundleno = 2 (0x2), region = 144 }

</bundles_post_ra>
